<compile_context>
chip_gen: v5e
topology: v5e:2x2
jax: 0.10.0
libtpu: 0.0.40
codegen_flags: <defaults>
</compile_context>

<pallas_src>
import math
import functools

import jax
import jax.numpy as jnp
from jax import lax
from jax.experimental import pallas as pl
from jax.experimental.pallas import tpu as pltpu


# ----------------------------------------------------------------------------
# Kernel
# ----------------------------------------------------------------------------
def _layer_norm(x, gamma, beta, eps=1e-5):
    mu = jnp.mean(x, axis=-1, keepdims=True)
    xc = x - mu
    var = jnp.mean(xc * xc, axis=-1, keepdims=True)
    return xc * lax.rsqrt(var + eps) * gamma + beta


def encoder_kernel(x_ref, pe_ref,
                   wq_ref, bq_ref, wk_ref, bk_ref, wv_ref, bv_ref,
                   wo_ref, bo_ref, ln1g_ref, ln1b_ref,
                   w1_ref, b1_ref, w2_ref, b2_ref,
                   ln2g_ref, ln2b_ref,
                   o_ref,
                   ctx_ref,
                   *, n_heads, head_dim):
    """One (batch element, layer) step.  grid = (B, n_layers).

    The (S, E) activation lives in the output block `o_ref`, whose block index
    is constant along the layer axis: it stays VMEM-resident across all layers
    of a batch element and is written back to HBM exactly once per batch.
    """
    l = pl.program_id(1)

    # ---- layer 0: PositionalEncoder add (dropout with p=0 -> identity) ------
    @pl.when(l == 0)
    def _():
        o_ref[...] = x_ref[...] + pe_ref[...]

    fx = o_ref[...]                                   # (S, E) f32 residual stream
    fx_b = fx.astype(jnp.bfloat16)
    scale = 1.0 / math.sqrt(head_dim)

    # ---- multi-head self-attention: head-packed projections ------------------
    q = jnp.dot(fx_b, wq_ref[...], preferred_element_type=jnp.float32) + bq_ref[...]
    k = jnp.dot(fx_b, wk_ref[...], preferred_element_type=jnp.float32) + bk_ref[...]
    v = jnp.dot(fx_b, wv_ref[...], preferred_element_type=jnp.float32) + bv_ref[...]
    q = q * scale      # fold 1/sqrt(A) into (S, H*A) q instead of (S, S) scores

    for h in range(n_heads):                          # static, small H
        sl = slice(h * head_dim, (h + 1) * head_dim)
        qh = q[:, sl].astype(jnp.bfloat16)
        kh = k[:, sl].astype(jnp.bfloat16)
        vh = v[:, sl].astype(jnp.bfloat16)
        s = lax.dot_general(qh, kh, (((1,), (1,)), ((), ())),
                            preferred_element_type=jnp.float32)       # (S, S)
        s = s - jnp.max(s, axis=-1, keepdims=True)
        p = jnp.exp(s)
        p = p * pl.reciprocal(jnp.sum(p, axis=-1, keepdims=True), approx=True)
        ctx_ref[:, sl] = jnp.dot(p.astype(jnp.bfloat16), vh,
                                 preferred_element_type=jnp.float32)  # (S, A)

    attn = jnp.dot(ctx_ref[...].astype(jnp.bfloat16), wo_ref[...],
                   preferred_element_type=jnp.float32) + bo_ref[...]

    # ---- residual + LayerNorm 1 (f32) -----------------------------------------
    res1 = _layer_norm(fx + attn, ln1g_ref[...], ln1b_ref[...])

    # ---- MLP: Linear -> ReLU -> Linear ----------------------------------------
    h1 = jnp.dot(res1.astype(jnp.bfloat16), w1_ref[...],
                 preferred_element_type=jnp.float32) + b1_ref[...]
    h1 = jnp.maximum(h1, 0.0)
    ff = jnp.dot(h1.astype(jnp.bfloat16), w2_ref[...],
                 preferred_element_type=jnp.float32) + b2_ref[...]

    # ---- residual + LayerNorm 2 -> carried activation --------------------------
    o_ref[...] = _layer_norm(res1 + ff, ln2g_ref[...], ln2b_ref[...])


# ----------------------------------------------------------------------------
# Wrapper
# ----------------------------------------------------------------------------
def encoder_forward(x, params):
    """Equivalent of Encoder.forward(x) with use_mask=False, drop_p=0 (eval)."""
    B, S, E = x.shape
    L = params["n_layers"]
    H = params["n_heads"]
    A = params["head_dim"]
    w = params["stacked"]

    def bcast_spec(shape):                 # same block for every grid step
        nd = len(shape)
        return pl.BlockSpec(tuple(shape), lambda b, l, _nd=nd: (0,) * _nd)

    def per_batch_spec(shape):             # (B, S, E): one batch element per step
        nd = len(shape)
        return pl.BlockSpec((None,) + tuple(shape[1:]),
                            lambda b, l, _nd=nd: (b,) + (0,) * (_nd - 1))

    def per_layer_spec(arr):               # (L, ...): one layer's weights per step
        nd = arr.ndim
        return pl.BlockSpec((None,) + tuple(arr.shape[1:]),
                            lambda b, l, _nd=nd: (l,) + (0,) * (_nd - 1))

    weights = [w["wq"], w["bq"], w["wk"], w["bk"], w["wv"], w["bv"],
               w["wo"], w["bo"], w["ln1_g"], w["ln1_b"],
               w["w1"], w["b1"], w["w2"], w["b2"],
               w["ln2_g"], w["ln2_b"]]

    kernel = functools.partial(encoder_kernel, n_heads=H, head_dim=A)
    out = pl.pallas_call(
        kernel,
        out_shape=jax.ShapeDtypeStruct((B, S, E), jnp.float32),
        grid=(B, L),
        in_specs=[per_batch_spec(x.shape),
                  bcast_spec(params["pos_enc"].shape)]
                 + [per_layer_spec(a) for a in weights],
        out_specs=per_batch_spec((B, S, E)),
        scratch_shapes=[pltpu.VMEM((S, H * A), jnp.float32)],
        compiler_params=pltpu.CompilerParams(
            dimension_semantics=("parallel", "arbitrary"),
            vmem_limit_bytes=64 * 1024 * 1024),
    )(x, params["pos_enc"], *weights)
    return out


# ----------------------------------------------------------------------------
# Deterministic parameter construction
# ----------------------------------------------------------------------------
def sinusoidal_pos_encoding(seq_len, emb_size):
    pos = jnp.arange(seq_len, dtype=jnp.float32)[:, None]
    i = jnp.arange(emb_size)[None, :]
    div = jnp.power(10000.0, (2 * (i // 2)).astype(jnp.float32) / emb_size)
    ang = pos / div
    pe = jnp.where(i % 2 == 0, jnp.sin(ang), jnp.cos(ang))
    return pe.astype(jnp.float32)


def init_params(key, seq_len, emb_size, attn_size, n_layers, n_heads):
    head_dim = attn_size
    proj = n_heads * head_dim

    def lin(k, fan_in, fan_out):
        return (jax.random.normal(k, (fan_in, fan_out), jnp.float32)
                / math.sqrt(fan_in))

    wq, wk, wv, wo, w1, w2 = [], [], [], [], [], []
    for _ in range(n_layers):
        key, k0, k1, k2, k3, k4, k5 = jax.random.split(key, 7)
        # Head-packed layout: head h uses columns h*A:(h+1)*A of (E, H*A).
        wq.append(lin(k0, emb_size, proj))
        wk.append(lin(k1, emb_size, proj))
        wv.append(lin(k2, emb_size, proj))
        wo.append(lin(k3, proj, emb_size))
        w1.append(lin(k4, emb_size, emb_size))
        w2.append(lin(k5, emb_size, emb_size))

    L, bf, f32 = n_layers, jnp.bfloat16, jnp.float32
    kb = jax.random.split(key, 6)
    stacked = dict(
        # matmul weights stored in bf16 (f32-accumulated on the MXU)
        wq=jnp.stack(wq).astype(bf), wk=jnp.stack(wk).astype(bf),
        wv=jnp.stack(wv).astype(bf),                          # (L, E, H*A)
        wo=jnp.stack(wo).astype(bf),                          # (L, H*A, E)
        w1=jnp.stack(w1).astype(bf), w2=jnp.stack(w2).astype(bf),   # (L, E, E)
        # biases / LayerNorm params stay f32
        bq=0.1 * jax.random.normal(kb[0], (L, 1, proj), f32),
        bk=0.1 * jax.random.normal(kb[1], (L, 1, proj), f32),
        bv=0.1 * jax.random.normal(kb[2], (L, 1, proj), f32),
        bo=0.1 * jax.random.normal(kb[3], (L, 1, emb_size), f32),
        b1=0.1 * jax.random.normal(kb[4], (L, 1, emb_size), f32),
        b2=0.1 * jax.random.normal(kb[5], (L, 1, emb_size), f32),
        ln1_g=jnp.ones((L, 1, emb_size), f32),
        ln1_b=jnp.zeros((L, 1, emb_size), f32),
        ln2_g=jnp.ones((L, 1, emb_size), f32),
        ln2_b=jnp.zeros((L, 1, emb_size), f32),
    )
    return dict(pos_enc=sinusoidal_pos_encoding(seq_len, emb_size),
                stacked=stacked, n_layers=n_layers,
                n_heads=n_heads, head_dim=head_dim)


# ----------------------------------------------------------------------------
# Pure-JAX reference (f32 activation math, per-batch attention, exact softmax)
# ----------------------------------------------------------------------------
def encoder_reference(x, params):
    w = params["stacked"]
    H, A = params["n_heads"], params["head_dim"]
    fx = x + params["pos_enc"][None]
    for l in range(params["n_layers"]):
        wq = w["wq"][l].astype(jnp.float32)
        wk = w["wk"][l].astype(jnp.float32)
        wv = w["wv"][l].astype(jnp.float32)
        wo = w["wo"][l].astype(jnp.float32)
        q = fx @ wq + w["bq"][l]
        k = fx @ wk + w["bk"][l]
        v = fx @ wv + w["bv"][l]
        heads = []
        for h in range(H):
            sl = slice(h * A, (h + 1) * A)
            s = jnp.einsum("bqa,bka->bqk", q[..., sl], k[..., sl]) / math.sqrt(A)
            p = jax.nn.softmax(s, axis=-1)
            heads.append(jnp.einsum("bqk,bka->bqa", p, v[..., sl]))
        attn = jnp.concatenate(heads, axis=-1) @ wo + w["bo"][l]
        res1 = _layer_norm(fx + attn, w["ln1_g"][l], w["ln1_b"][l])
        w1 = w["w1"][l].astype(jnp.float32)
        w2 = w["w2"][l].astype(jnp.float32)
        ff = jnp.maximum(res1 @ w1 + w["b1"][l], 0.0) @ w2 + w["b2"][l]
        fx = _layer_norm(res1 + ff, w["ln2_g"][l], w["ln2_b"][l])
    return fx


# ----------------------------------------------------------------------------
if __name__ == "__main__":
    # Shapes consistent with Encoder(seq_len=8, emb_size=32, attn_size=16,
    #                                n_layers=2, n_heads=2)
    B, S, E = 2, 8, 32
    ATTN, N_LAYERS, N_HEADS = 16, 2, 2

    key = jax.random.PRNGKey(0)
    k_x, k_p = jax.random.split(key)
    x = jax.random.normal(k_x, (B, S, E), dtype=jnp.float32)
    params = init_params(k_p, S, E, ATTN, N_LAYERS, N_HEADS)

    out = encoder_forward(x, params)
    out = jax.block_until_ready(out)

    assert out.shape == (B, S, E) and out.dtype == jnp.float32
    assert bool(jnp.all(jnp.isfinite(out)))

    ref = encoder_reference(x, params)
    max_err = float(jnp.max(jnp.abs(out - ref)))
    mean_err = float(jnp.mean(jnp.abs(out - ref)))
    # bf16 matmul operands + approx softmax reciprocal in the kernel vs. the
    # all-f32 reference -> small deviation; tolerances reflect that.
    assert max_err < 1e-1, f"max mismatch vs reference: {max_err}"
    assert mean_err < 2e-2, f"mean mismatch vs reference: {mean_err}"

    print("KERNEL_OK")
</pallas_src>

<mosaic_0001>
module attributes {stable_mosaic.version = 11 : i64} {
  func.func @encoder_kernel(%arg0: i32, %arg1: i32, %arg2: memref<1x8x32xf32, #tpu.memory_space<vmem>>, %arg3: memref<8x32xf32, #tpu.memory_space<vmem>>, %arg4: memref<1x32x32xbf16, #tpu.memory_space<vmem>>, %arg5: memref<1x1x32xf32, #tpu.memory_space<vmem>>, %arg6: memref<1x32x32xbf16, #tpu.memory_space<vmem>>, %arg7: memref<1x1x32xf32, #tpu.memory_space<vmem>>, %arg8: memref<1x32x32xbf16, #tpu.memory_space<vmem>>, %arg9: memref<1x1x32xf32, #tpu.memory_space<vmem>>, %arg10: memref<1x32x32xbf16, #tpu.memory_space<vmem>>, %arg11: memref<1x1x32xf32, #tpu.memory_space<vmem>>, %arg12: memref<1x1x32xf32, #tpu.memory_space<vmem>>, %arg13: memref<1x1x32xf32, #tpu.memory_space<vmem>>, %arg14: memref<1x32x32xbf16, #tpu.memory_space<vmem>>, %arg15: memref<1x1x32xf32, #tpu.memory_space<vmem>>, %arg16: memref<1x32x32xbf16, #tpu.memory_space<vmem>>, %arg17: memref<1x1x32xf32, #tpu.memory_space<vmem>>, %arg18: memref<1x1x32xf32, #tpu.memory_space<vmem>>, %arg19: memref<1x1x32xf32, #tpu.memory_space<vmem>>, %arg20: memref<1x8x32xf32, #tpu.memory_space<vmem>>, %arg21: memref<8x32xf32, #tpu.memory_space<vmem>>) attributes {dimension_semantics = [#tpu.dimension_semantics<parallel>, #tpu.dimension_semantics<arbitrary>], iteration_bounds = array<i64: 2, 2>, scalar_prefetch = 0 : i64, scratch_operands = 1 : i64, tpu.core_type = #tpu.core_type<tc>, window_params = [{transform_indices = @transform_0, window_bounds = array<i64: 1, 8, 32>}, {pipeline_mode = #tpu.pipeline_mode<synchronous>, transform_indices = @transform_1, window_bounds = array<i64: 8, 32>}, {transform_indices = @transform_2, window_bounds = array<i64: 1, 32, 32>}, {transform_indices = @transform_3, window_bounds = array<i64: 1, 1, 32>}, {transform_indices = @transform_4, window_bounds = array<i64: 1, 32, 32>}, {transform_indices = @transform_5, window_bounds = array<i64: 1, 1, 32>}, {transform_indices = @transform_6, window_bounds = array<i64: 1, 32, 32>}, {transform_indices = @transform_7, window_bounds = array<i64: 1, 1, 32>}, {transform_indices = @transform_8, window_bounds = array<i64: 1, 32, 32>}, {transform_indices = @transform_9, window_bounds = array<i64: 1, 1, 32>}, {transform_indices = @transform_10, window_bounds = array<i64: 1, 1, 32>}, {transform_indices = @transform_11, window_bounds = array<i64: 1, 1, 32>}, {transform_indices = @transform_12, window_bounds = array<i64: 1, 32, 32>}, {transform_indices = @transform_13, window_bounds = array<i64: 1, 1, 32>}, {transform_indices = @transform_14, window_bounds = array<i64: 1, 32, 32>}, {transform_indices = @transform_15, window_bounds = array<i64: 1, 1, 32>}, {transform_indices = @transform_16, window_bounds = array<i64: 1, 1, 32>}, {transform_indices = @transform_17, window_bounds = array<i64: 1, 1, 32>}, {transform_indices = @transform_18, window_bounds = array<i64: 1, 8, 32>}]} {
    %c0_i32 = arith.constant 0 : i32
    %0 = arith.cmpi eq, %arg1, %c0_i32 : i32
    %1 = arith.extui %0 : i1 to i32
    %c0_i32_0 = arith.constant 0 : i32
    %2 = arith.cmpi ne, %1, %c0_i32_0 : i32
    scf.if %2 {
      %c0_84 = arith.constant 0 : index
      %c0_85 = arith.constant 0 : index
      %c0_86 = arith.constant 0 : index
      %149 = vector.load %arg2[%c0_84, %c0_85, %c0_86] : memref<1x8x32xf32, #tpu.memory_space<vmem>>, vector<1x8x32xf32>
      %150 = vector.shape_cast %149 : vector<1x8x32xf32> to vector<8x32xf32>
      %c0_87 = arith.constant 0 : index
      %c0_88 = arith.constant 0 : index
      %151 = vector.load %arg3[%c0_87, %c0_88] : memref<8x32xf32, #tpu.memory_space<vmem>>, vector<8x32xf32>
      %152 = arith.addf %150, %151 : vector<8x32xf32>
      %c0_89 = arith.constant 0 : index
      %c0_90 = arith.constant 0 : index
      %c0_91 = arith.constant 0 : index
      %153 = vector.load %arg20[%c0_89, %c0_90, %c0_91] : memref<1x8x32xf32, #tpu.memory_space<vmem>>, vector<1x8x32xf32>
      %154 = vector.shape_cast %153 : vector<1x8x32xf32> to vector<8x32xf32>
      %155 = vector.shape_cast %152 : vector<8x32xf32> to vector<1x8x32xf32>
      tpu.vector_store %arg20[%c0_89, %c0_90, %c0_91], %155 {strides = array<i32>} : memref<1x8x32xf32, #tpu.memory_space<vmem>>, vector<1x8x32xf32>,
    } else {
    }
    %c0 = arith.constant 0 : index
    %c0_1 = arith.constant 0 : index
    %c0_2 = arith.constant 0 : index
    %3 = vector.load %arg20[%c0, %c0_1, %c0_2] : memref<1x8x32xf32, #tpu.memory_space<vmem>>, vector<1x8x32xf32>
    %4 = vector.shape_cast %3 : vector<1x8x32xf32> to vector<8x32xf32>
    %5 = arith.truncf %4 : vector<8x32xf32> to vector<8x32xbf16>
    %c0_3 = arith.constant 0 : index
    %c0_4 = arith.constant 0 : index
    %c0_5 = arith.constant 0 : index
    %6 = vector.load %arg4[%c0_3, %c0_4, %c0_5] : memref<1x32x32xbf16, #tpu.memory_space<vmem>>, vector<1x32x32xbf16>
    %7 = vector.shape_cast %6 : vector<1x32x32xbf16> to vector<32x32xbf16>
    %cst = arith.constant dense<0.000000e+00> : vector<8x32xf32>
    %8 = tpu.matmul %5, %7, %cst {dimension_numbers = #tpu.dot_dimension_numbers<[1], [0], [0], [1], [0, 0, 1, 1], [], []>} : vector<8x32xbf16>, vector<32x32xbf16>, vector<8x32xf32> -> vector<8x32xf32>
    %c0_6 = arith.constant 0 : index
    %c0_7 = arith.constant 0 : index
    %c0_8 = arith.constant 0 : index
    %9 = vector.load %arg5[%c0_6, %c0_7, %c0_8] : memref<1x1x32xf32, #tpu.memory_space<vmem>>, vector<1x1x32xf32>
    %10 = vector.shape_cast %9 : vector<1x1x32xf32> to vector<1x32xf32>
    %11 = vector.broadcast %10 : vector<1x32xf32> to vector<8x32xf32>
    %12 = arith.addf %8, %11 : vector<8x32xf32>
    %c0_9 = arith.constant 0 : index
    %c0_10 = arith.constant 0 : index
    %c0_11 = arith.constant 0 : index
    %13 = vector.load %arg6[%c0_9, %c0_10, %c0_11] : memref<1x32x32xbf16, #tpu.memory_space<vmem>>, vector<1x32x32xbf16>
    %14 = vector.shape_cast %13 : vector<1x32x32xbf16> to vector<32x32xbf16>
    %cst_12 = arith.constant dense<0.000000e+00> : vector<8x32xf32>
    %15 = tpu.matmul %5, %14, %cst_12 {dimension_numbers = #tpu.dot_dimension_numbers<[1], [0], [0], [1], [0, 0, 1, 1], [], []>} : vector<8x32xbf16>, vector<32x32xbf16>, vector<8x32xf32> -> vector<8x32xf32>
    %c0_13 = arith.constant 0 : index
    %c0_14 = arith.constant 0 : index
    %c0_15 = arith.constant 0 : index
    %16 = vector.load %arg7[%c0_13, %c0_14, %c0_15] : memref<1x1x32xf32, #tpu.memory_space<vmem>>, vector<1x1x32xf32>
    %17 = vector.shape_cast %16 : vector<1x1x32xf32> to vector<1x32xf32>
    %18 = vector.broadcast %17 : vector<1x32xf32> to vector<8x32xf32>
    %19 = arith.addf %15, %18 : vector<8x32xf32>
    %c0_16 = arith.constant 0 : index
    %c0_17 = arith.constant 0 : index
    %c0_18 = arith.constant 0 : index
    %20 = vector.load %arg8[%c0_16, %c0_17, %c0_18] : memref<1x32x32xbf16, #tpu.memory_space<vmem>>, vector<1x32x32xbf16>
    %21 = vector.shape_cast %20 : vector<1x32x32xbf16> to vector<32x32xbf16>
    %cst_19 = arith.constant dense<0.000000e+00> : vector<8x32xf32>
    %22 = tpu.matmul %5, %21, %cst_19 {dimension_numbers = #tpu.dot_dimension_numbers<[1], [0], [0], [1], [0, 0, 1, 1], [], []>} : vector<8x32xbf16>, vector<32x32xbf16>, vector<8x32xf32> -> vector<8x32xf32>
    %c0_20 = arith.constant 0 : index
    %c0_21 = arith.constant 0 : index
    %c0_22 = arith.constant 0 : index
    %23 = vector.load %arg9[%c0_20, %c0_21, %c0_22] : memref<1x1x32xf32, #tpu.memory_space<vmem>>, vector<1x1x32xf32>
    %24 = vector.shape_cast %23 : vector<1x1x32xf32> to vector<1x32xf32>
    %25 = vector.broadcast %24 : vector<1x32xf32> to vector<8x32xf32>
    %26 = arith.addf %22, %25 : vector<8x32xf32>
    %cst_23 = arith.constant 2.500000e-01 : f32
    %27 = vector.broadcast %cst_23 : f32 to vector<8x32xf32>
    %28 = arith.mulf %12, %27 : vector<8x32xf32>
    %29 = vector.extract_strided_slice %28 {offsets = [0, 0], sizes = [8, 16], strides = [1, 1]} : vector<8x32xf32> to vector<8x16xf32>
    %30 = arith.truncf %29 : vector<8x16xf32> to vector<8x16xbf16>
    %31 = vector.extract_strided_slice %19 {offsets = [0, 0], sizes = [8, 16], strides = [1, 1]} : vector<8x32xf32> to vector<8x16xf32>
    %32 = arith.truncf %31 : vector<8x16xf32> to vector<8x16xbf16>
    %33 = vector.extract_strided_slice %26 {offsets = [0, 0], sizes = [8, 16], strides = [1, 1]} : vector<8x32xf32> to vector<8x16xf32>
    %34 = arith.truncf %33 : vector<8x16xf32> to vector<8x16xbf16>
    %cst_24 = arith.constant dense<0.000000e+00> : vector<8x8xf32>
    %35 = tpu.matmul %30, %32, %cst_24 {dimension_numbers = #tpu.dot_dimension_numbers<[1], [1], [0], [0], [0, 0, 1, 0], [], []>} : vector<8x16xbf16>, vector<8x16xbf16>, vector<8x8xf32> -> vector<8x8xf32>
    %cst_25 = arith.constant dense<0xFF800000> : vector<8xf32>
    %36 = vector.multi_reduction <maximumf>, %35, %cst_25 [1] : vector<8x8xf32> to vector<8xf32>
    %37 = vector.shape_cast %36 : vector<8xf32> to vector<8x1xf32>
    %38 = vector.broadcast %37 : vector<8x1xf32> to vector<8x8xf32>
    %39 = arith.subf %35, %38 : vector<8x8xf32>
    %40 = math.exp %39 : vector<8x8xf32>
    %cst_26 = arith.constant dense<0.000000e+00> : vector<8xf32>
    %41 = vector.multi_reduction <add>, %40, %cst_26 [1] : vector<8x8xf32> to vector<8xf32>
    %42 = vector.shape_cast %41 : vector<8xf32> to vector<8x1xf32>
    %43 = tpu.reciprocal %42 {approx = true} : vector<8x1xf32> -> vector<8x1xf32>
    %44 = vector.broadcast %43 : vector<8x1xf32> to vector<8x8xf32>
    %45 = arith.mulf %40, %44 : vector<8x8xf32>
    %46 = arith.truncf %45 : vector<8x8xf32> to vector<8x8xbf16>
    %cst_27 = arith.constant dense<0.000000e+00> : vector<8x16xf32>
    %47 = tpu.matmul %46, %34, %cst_27 {dimension_numbers = #tpu.dot_dimension_numbers<[1], [0], [0], [1], [0, 0, 1, 1], [], []>} : vector<8x8xbf16>, vector<8x16xbf16>, vector<8x16xf32> -> vector<8x16xf32>
    %c0_28 = arith.constant 0 : index
    %c0_29 = arith.constant 0 : index
    %48 = vector.load %arg21[%c0_28, %c0_29] : memref<8x32xf32, #tpu.memory_space<vmem>>, vector<8x16xf32>
    tpu.vector_store %arg21[%c0_28, %c0_29], %47 {strides = array<i32>} : memref<8x32xf32, #tpu.memory_space<vmem>>, vector<8x16xf32>,
    %49 = vector.extract_strided_slice %28 {offsets = [0, 16], sizes = [8, 16], strides = [1, 1]} : vector<8x32xf32> to vector<8x16xf32>
    %50 = arith.truncf %49 : vector<8x16xf32> to vector<8x16xbf16>
    %51 = vector.extract_strided_slice %19 {offsets = [0, 16], sizes = [8, 16], strides = [1, 1]} : vector<8x32xf32> to vector<8x16xf32>
    %52 = arith.truncf %51 : vector<8x16xf32> to vector<8x16xbf16>
    %53 = vector.extract_strided_slice %26 {offsets = [0, 16], sizes = [8, 16], strides = [1, 1]} : vector<8x32xf32> to vector<8x16xf32>
    %54 = arith.truncf %53 : vector<8x16xf32> to vector<8x16xbf16>
    %cst_30 = arith.constant dense<0.000000e+00> : vector<8x8xf32>
    %55 = tpu.matmul %50, %52, %cst_30 {dimension_numbers = #tpu.dot_dimension_numbers<[1], [1], [0], [0], [0, 0, 1, 0], [], []>} : vector<8x16xbf16>, vector<8x16xbf16>, vector<8x8xf32> -> vector<8x8xf32>
    %cst_31 = arith.constant dense<0xFF800000> : vector<8xf32>
    %56 = vector.multi_reduction <maximumf>, %55, %cst_31 [1] : vector<8x8xf32> to vector<8xf32>
    %57 = vector.shape_cast %56 : vector<8xf32> to vector<8x1xf32>
    %58 = vector.broadcast %57 : vector<8x1xf32> to vector<8x8xf32>
    %59 = arith.subf %55, %58 : vector<8x8xf32>
    %60 = math.exp %59 : vector<8x8xf32>
    %cst_32 = arith.constant dense<0.000000e+00> : vector<8xf32>
    %61 = vector.multi_reduction <add>, %60, %cst_32 [1] : vector<8x8xf32> to vector<8xf32>
    %62 = vector.shape_cast %61 : vector<8xf32> to vector<8x1xf32>
    %63 = tpu.reciprocal %62 {approx = true} : vector<8x1xf32> -> vector<8x1xf32>
    %64 = vector.broadcast %63 : vector<8x1xf32> to vector<8x8xf32>
    %65 = arith.mulf %60, %64 : vector<8x8xf32>
    %66 = arith.truncf %65 : vector<8x8xf32> to vector<8x8xbf16>
    %cst_33 = arith.constant dense<0.000000e+00> : vector<8x16xf32>
    %67 = tpu.matmul %66, %54, %cst_33 {dimension_numbers = #tpu.dot_dimension_numbers<[1], [0], [0], [1], [0, 0, 1, 1], [], []>} : vector<8x8xbf16>, vector<8x16xbf16>, vector<8x16xf32> -> vector<8x16xf32>
    %c0_34 = arith.constant 0 : index
    %c16 = arith.constant 16 : index
    %68 = vector.load %arg21[%c0_34, %c16] : memref<8x32xf32, #tpu.memory_space<vmem>>, vector<8x16xf32>
    tpu.vector_store %arg21[%c0_34, %c16], %67 {strides = array<i32>} : memref<8x32xf32, #tpu.memory_space<vmem>>, vector<8x16xf32>,
    %c0_35 = arith.constant 0 : index
    %c0_36 = arith.constant 0 : index
    %69 = vector.load %arg21[%c0_35, %c0_36] : memref<8x32xf32, #tpu.memory_space<vmem>>, vector<8x32xf32>
    %70 = arith.truncf %69 : vector<8x32xf32> to vector<8x32xbf16>
    %c0_37 = arith.constant 0 : index
    %c0_38 = arith.constant 0 : index
    %c0_39 = arith.constant 0 : index
    %71 = vector.load %arg10[%c0_37, %c0_38, %c0_39] : memref<1x32x32xbf16, #tpu.memory_space<vmem>>, vector<1x32x32xbf16>
    %72 = vector.shape_cast %71 : vector<1x32x32xbf16> to vector<32x32xbf16>
    %cst_40 = arith.constant dense<0.000000e+00> : vector<8x32xf32>
    %73 = tpu.matmul %70, %72, %cst_40 {dimension_numbers = #tpu.dot_dimension_numbers<[1], [0], [0], [1], [0, 0, 1, 1], [], []>} : vector<8x32xbf16>, vector<32x32xbf16>, vector<8x32xf32> -> vector<8x32xf32>
    %c0_41 = arith.constant 0 : index
    %c0_42 = arith.constant 0 : index
    %c0_43 = arith.constant 0 : index
    %74 = vector.load %arg11[%c0_41, %c0_42, %c0_43] : memref<1x1x32xf32, #tpu.memory_space<vmem>>, vector<1x1x32xf32>
    %75 = vector.shape_cast %74 : vector<1x1x32xf32> to vector<1x32xf32>
    %76 = vector.broadcast %75 : vector<1x32xf32> to vector<8x32xf32>
    %77 = arith.addf %73, %76 : vector<8x32xf32>
    %78 = arith.addf %4, %77 : vector<8x32xf32>
    %c0_44 = arith.constant 0 : index
    %c0_45 = arith.constant 0 : index
    %c0_46 = arith.constant 0 : index
    %79 = vector.load %arg12[%c0_44, %c0_45, %c0_46] : memref<1x1x32xf32, #tpu.memory_space<vmem>>, vector<1x1x32xf32>
    %80 = vector.shape_cast %79 : vector<1x1x32xf32> to vector<1x32xf32>
    %c0_47 = arith.constant 0 : index
    %c0_48 = arith.constant 0 : index
    %c0_49 = arith.constant 0 : index
    %81 = vector.load %arg13[%c0_47, %c0_48, %c0_49] : memref<1x1x32xf32, #tpu.memory_space<vmem>>, vector<1x1x32xf32>
    %82 = vector.shape_cast %81 : vector<1x1x32xf32> to vector<1x32xf32>
    %cst_50 = arith.constant dense<0.000000e+00> : vector<8xf32>
    %83 = vector.multi_reduction <add>, %78, %cst_50 [1] : vector<8x32xf32> to vector<8xf32>
    %84 = vector.shape_cast %83 : vector<8xf32> to vector<8x1xf32>
    %cst_51 = arith.constant 3.200000e+01 : f32
    %85 = vector.broadcast %cst_51 : f32 to vector<8x1xf32>
    %86 = arith.divf %84, %85 : vector<8x1xf32>
    %87 = vector.broadcast %86 : vector<8x1xf32> to vector<8x32xf32>
    %88 = arith.subf %78, %87 : vector<8x32xf32>
    %89 = arith.mulf %88, %88 : vector<8x32xf32>
    %cst_52 = arith.constant dense<0.000000e+00> : vector<8xf32>
    %90 = vector.multi_reduction <add>, %89, %cst_52 [1] : vector<8x32xf32> to vector<8xf32>
    %91 = vector.shape_cast %90 : vector<8xf32> to vector<8x1xf32>
    %cst_53 = arith.constant 3.200000e+01 : f32
    %92 = vector.broadcast %cst_53 : f32 to vector<8x1xf32>
    %93 = arith.divf %91, %92 : vector<8x1xf32>
    %cst_54 = arith.constant 9.99999974E-6 : f32
    %94 = vector.broadcast %cst_54 : f32 to vector<8x1xf32>
    %95 = arith.addf %93, %94 : vector<8x1xf32>
    %96 = math.rsqrt %95 : vector<8x1xf32>
    %97 = vector.broadcast %96 : vector<8x1xf32> to vector<8x32xf32>
    %98 = arith.mulf %88, %97 : vector<8x32xf32>
    %99 = vector.broadcast %80 : vector<1x32xf32> to vector<8x32xf32>
    %100 = arith.mulf %98, %99 : vector<8x32xf32>
    %101 = vector.broadcast %82 : vector<1x32xf32> to vector<8x32xf32>
    %102 = arith.addf %100, %101 : vector<8x32xf32>
    %103 = arith.truncf %102 : vector<8x32xf32> to vector<8x32xbf16>
    %c0_55 = arith.constant 0 : index
    %c0_56 = arith.constant 0 : index
    %c0_57 = arith.constant 0 : index
    %104 = vector.load %arg14[%c0_55, %c0_56, %c0_57] : memref<1x32x32xbf16, #tpu.memory_space<vmem>>, vector<1x32x32xbf16>
    %105 = vector.shape_cast %104 : vector<1x32x32xbf16> to vector<32x32xbf16>
    %cst_58 = arith.constant dense<0.000000e+00> : vector<8x32xf32>
    %106 = tpu.matmul %103, %105, %cst_58 {dimension_numbers = #tpu.dot_dimension_numbers<[1], [0], [0], [1], [0, 0, 1, 1], [], []>} : vector<8x32xbf16>, vector<32x32xbf16>, vector<8x32xf32> -> vector<8x32xf32>
    %c0_59 = arith.constant 0 : index
    %c0_60 = arith.constant 0 : index
    %c0_61 = arith.constant 0 : index
    %107 = vector.load %arg15[%c0_59, %c0_60, %c0_61] : memref<1x1x32xf32, #tpu.memory_space<vmem>>, vector<1x1x32xf32>
    %108 = vector.shape_cast %107 : vector<1x1x32xf32> to vector<1x32xf32>
    %109 = vector.broadcast %108 : vector<1x32xf32> to vector<8x32xf32>
    %110 = arith.addf %106, %109 : vector<8x32xf32>
    %cst_62 = arith.constant 0.000000e+00 : f32
    %111 = vector.broadcast %cst_62 : f32 to vector<8x32xf32>
    %112 = arith.maximumf %110, %111 : vector<8x32xf32>
    %113 = arith.truncf %112 : vector<8x32xf32> to vector<8x32xbf16>
    %c0_63 = arith.constant 0 : index
    %c0_64 = arith.constant 0 : index
    %c0_65 = arith.constant 0 : index
    %114 = vector.load %arg16[%c0_63, %c0_64, %c0_65] : memref<1x32x32xbf16, #tpu.memory_space<vmem>>, vector<1x32x32xbf16>
    %115 = vector.shape_cast %114 : vector<1x32x32xbf16> to vector<32x32xbf16>
    %cst_66 = arith.constant dense<0.000000e+00> : vector<8x32xf32>
    %116 = tpu.matmul %113, %115, %cst_66 {dimension_numbers = #tpu.dot_dimension_numbers<[1], [0], [0], [1], [0, 0, 1, 1], [], []>} : vector<8x32xbf16>, vector<32x32xbf16>, vector<8x32xf32> -> vector<8x32xf32>
    %c0_67 = arith.constant 0 : index
    %c0_68 = arith.constant 0 : index
    %c0_69 = arith.constant 0 : index
    %117 = vector.load %arg17[%c0_67, %c0_68, %c0_69] : memref<1x1x32xf32, #tpu.memory_space<vmem>>, vector<1x1x32xf32>
    %118 = vector.shape_cast %117 : vector<1x1x32xf32> to vector<1x32xf32>
    %119 = vector.broadcast %118 : vector<1x32xf32> to vector<8x32xf32>
    %120 = arith.addf %116, %119 : vector<8x32xf32>
    %121 = arith.addf %102, %120 : vector<8x32xf32>
    %c0_70 = arith.constant 0 : index
    %c0_71 = arith.constant 0 : index
    %c0_72 = arith.constant 0 : index
    %122 = vector.load %arg18[%c0_70, %c0_71, %c0_72] : memref<1x1x32xf32, #tpu.memory_space<vmem>>, vector<1x1x32xf32>
    %123 = vector.shape_cast %122 : vector<1x1x32xf32> to vector<1x32xf32>
    %c0_73 = arith.constant 0 : index
    %c0_74 = arith.constant 0 : index
    %c0_75 = arith.constant 0 : index
    %124 = vector.load %arg19[%c0_73, %c0_74, %c0_75] : memref<1x1x32xf32, #tpu.memory_space<vmem>>, vector<1x1x32xf32>
    %125 = vector.shape_cast %124 : vector<1x1x32xf32> to vector<1x32xf32>
    %cst_76 = arith.constant dense<0.000000e+00> : vector<8xf32>
    %126 = vector.multi_reduction <add>, %121, %cst_76 [1] : vector<8x32xf32> to vector<8xf32>
    %127 = vector.shape_cast %126 : vector<8xf32> to vector<8x1xf32>
    %cst_77 = arith.constant 3.200000e+01 : f32
    %128 = vector.broadcast %cst_77 : f32 to vector<8x1xf32>
    %129 = arith.divf %127, %128 : vector<8x1xf32>
    %130 = vector.broadcast %129 : vector<8x1xf32> to vector<8x32xf32>
    %131 = arith.subf %121, %130 : vector<8x32xf32>
    %132 = arith.mulf %131, %131 : vector<8x32xf32>
    %cst_78 = arith.constant dense<0.000000e+00> : vector<8xf32>
    %133 = vector.multi_reduction <add>, %132, %cst_78 [1] : vector<8x32xf32> to vector<8xf32>
    %134 = vector.shape_cast %133 : vector<8xf32> to vector<8x1xf32>
    %cst_79 = arith.constant 3.200000e+01 : f32
    %135 = vector.broadcast %cst_79 : f32 to vector<8x1xf32>
    %136 = arith.divf %134, %135 : vector<8x1xf32>
    %cst_80 = arith.constant 9.99999974E-6 : f32
    %137 = vector.broadcast %cst_80 : f32 to vector<8x1xf32>
    %138 = arith.addf %136, %137 : vector<8x1xf32>
    %139 = math.rsqrt %138 : vector<8x1xf32>
    %140 = vector.broadcast %139 : vector<8x1xf32> to vector<8x32xf32>
    %141 = arith.mulf %131, %140 : vector<8x32xf32>
    %142 = vector.broadcast %123 : vector<1x32xf32> to vector<8x32xf32>
    %143 = arith.mulf %141, %142 : vector<8x32xf32>
    %144 = vector.broadcast %125 : vector<1x32xf32> to vector<8x32xf32>
    %145 = arith.addf %143, %144 : vector<8x32xf32>
    %c0_81 = arith.constant 0 : index
    %c0_82 = arith.constant 0 : index
    %c0_83 = arith.constant 0 : index
    %146 = vector.load %arg20[%c0_81, %c0_82, %c0_83] : memref<1x8x32xf32, #tpu.memory_space<vmem>>, vector<1x8x32xf32>
    %147 = vector.shape_cast %146 : vector<1x8x32xf32> to vector<8x32xf32>
    %148 = vector.shape_cast %145 : vector<8x32xf32> to vector<1x8x32xf32>
    tpu.vector_store %arg20[%c0_81, %c0_82, %c0_83], %148 {strides = array<i32>} : memref<1x8x32xf32, #tpu.memory_space<vmem>>, vector<1x8x32xf32>,
    return
  }
  func.func @transform_0(%arg0: i32, %arg1: i32) -> (i32, i32, i32) {
    %c0_i32 = arith.constant 0 : i32
    %c0_i32_0 = arith.constant 0 : i32
    %c0_i32_1 = arith.constant 0 : i32
    return %arg0, %c0_i32, %c0_i32_0 : i32, i32, i32
  }
  func.func @transform_1(%arg0: i32, %arg1: i32) -> (i32, i32) {
    %c0_i32 = arith.constant 0 : i32
    %c0_i32_0 = arith.constant 0 : i32
    %c0_i32_1 = arith.constant 0 : i32
    return %c0_i32, %c0_i32_0 : i32, i32
  }
  func.func @transform_2(%arg0: i32, %arg1: i32) -> (i32, i32, i32) {
    %c0_i32 = arith.constant 0 : i32
    %c0_i32_0 = arith.constant 0 : i32
    %c0_i32_1 = arith.constant 0 : i32
    return %arg1, %c0_i32, %c0_i32_0 : i32, i32, i32
  }
  func.func @transform_3(%arg0: i32, %arg1: i32) -> (i32, i32, i32) {
    %c0_i32 = arith.constant 0 : i32
    %c0_i32_0 = arith.constant 0 : i32
    %c0_i32_1 = arith.constant 0 : i32
    return %arg1, %c0_i32, %c0_i32_0 : i32, i32, i32
  }
  func.func @transform_4(%arg0: i32, %arg1: i32) -> (i32, i32, i32) {
    %c0_i32 = arith.constant 0 : i32
    %c0_i32_0 = arith.constant 0 : i32
    %c0_i32_1 = arith.constant 0 : i32
    return %arg1, %c0_i32, %c0_i32_0 : i32, i32, i32
  }
  func.func @transform_5(%arg0: i32, %arg1: i32) -> (i32, i32, i32) {
    %c0_i32 = arith.constant 0 : i32
    %c0_i32_0 = arith.constant 0 : i32
    %c0_i32_1 = arith.constant 0 : i32
    return %arg1, %c0_i32, %c0_i32_0 : i32, i32, i32
  }
  func.func @transform_6(%arg0: i32, %arg1: i32) -> (i32, i32, i32) {
    %c0_i32 = arith.constant 0 : i32
    %c0_i32_0 = arith.constant 0 : i32
    %c0_i32_1 = arith.constant 0 : i32
    return %arg1, %c0_i32, %c0_i32_0 : i32, i32, i32
  }
  func.func @transform_7(%arg0: i32, %arg1: i32) -> (i32, i32, i32) {
    %c0_i32 = arith.constant 0 : i32
    %c0_i32_0 = arith.constant 0 : i32
    %c0_i32_1 = arith.constant 0 : i32
    return %arg1, %c0_i32, %c0_i32_0 : i32, i32, i32
  }
  func.func @transform_8(%arg0: i32, %arg1: i32) -> (i32, i32, i32) {
    %c0_i32 = arith.constant 0 : i32
    %c0_i32_0 = arith.constant 0 : i32
    %c0_i32_1 = arith.constant 0 : i32
    return %arg1, %c0_i32, %c0_i32_0 : i32, i32, i32
  }
  func.func @transform_9(%arg0: i32, %arg1: i32) -> (i32, i32, i32) {
    %c0_i32 = arith.constant 0 : i32
    %c0_i32_0 = arith.constant 0 : i32
    %c0_i32_1 = arith.constant 0 : i32
    return %arg1, %c0_i32, %c0_i32_0 : i32, i32, i32
  }
  func.func @transform_10(%arg0: i32, %arg1: i32) -> (i32, i32, i32) {
    %c0_i32 = arith.constant 0 : i32
    %c0_i32_0 = arith.constant 0 : i32
    %c0_i32_1 = arith.constant 0 : i32
    return %arg1, %c0_i32, %c0_i32_0 : i32, i32, i32
  }
  func.func @transform_11(%arg0: i32, %arg1: i32) -> (i32, i32, i32) {
    %c0_i32 = arith.constant 0 : i32
    %c0_i32_0 = arith.constant 0 : i32
    %c0_i32_1 = arith.constant 0 : i32
    return %arg1, %c0_i32, %c0_i32_0 : i32, i32, i32
  }
  func.func @transform_12(%arg0: i32, %arg1: i32) -> (i32, i32, i32) {
    %c0_i32 = arith.constant 0 : i32
    %c0_i32_0 = arith.constant 0 : i32
    %c0_i32_1 = arith.constant 0 : i32
    return %arg1, %c0_i32, %c0_i32_0 : i32, i32, i32
  }
  func.func @transform_13(%arg0: i32, %arg1: i32) -> (i32, i32, i32) {
    %c0_i32 = arith.constant 0 : i32
    %c0_i32_0 = arith.constant 0 : i32
    %c0_i32_1 = arith.constant 0 : i32
    return %arg1, %c0_i32, %c0_i32_0 : i32, i32, i32
  }
  func.func @transform_14(%arg0: i32, %arg1: i32) -> (i32, i32, i32) {
    %c0_i32 = arith.constant 0 : i32
    %c0_i32_0 = arith.constant 0 : i32
    %c0_i32_1 = arith.constant 0 : i32
    return %arg1, %c0_i32, %c0_i32_0 : i32, i32, i32
  }
  func.func @transform_15(%arg0: i32, %arg1: i32) -> (i32, i32, i32) {
    %c0_i32 = arith.constant 0 : i32
    %c0_i32_0 = arith.constant 0 : i32
    %c0_i32_1 = arith.constant 0 : i32
    return %arg1, %c0_i32, %c0_i32_0 : i32, i32, i32
  }
  func.func @transform_16(%arg0: i32, %arg1: i32) -> (i32, i32, i32) {
    %c0_i32 = arith.constant 0 : i32
    %c0_i32_0 = arith.constant 0 : i32
    %c0_i32_1 = arith.constant 0 : i32
    return %arg1, %c0_i32, %c0_i32_0 : i32, i32, i32
  }
  func.func @transform_17(%arg0: i32, %arg1: i32) -> (i32, i32, i32) {
    %c0_i32 = arith.constant 0 : i32
    %c0_i32_0 = arith.constant 0 : i32
    %c0_i32_1 = arith.constant 0 : i32
    return %arg1, %c0_i32, %c0_i32_0 : i32, i32, i32
  }
  func.func @transform_18(%arg0: i32, %arg1: i32) -> (i32, i32, i32) {
    %c0_i32 = arith.constant 0 : i32
    %c0_i32_0 = arith.constant 0 : i32
    %c0_i32_1 = arith.constant 0 : i32
    return %arg0, %c0_i32, %c0_i32_0 : i32, i32, i32
  }
}

</mosaic_0001>

<bundles_post_ra>
// kernel: tpu_custom_call.1
= control target key start
LH: loop header
LB: loop body
LE: loop exit
PB: predicated region body
PF: predicated region fallthrough
CT: control target
= control target key end

     0   :  { %s3096_s0 = inlined_call_operand.hbm [shape: f32[2,8,32], index: 0, kind: input, shape index: {}]   ;;  %s3097_s1 = inlined_call_operand.hbm [shape: f32[8,32], index: 1, kind: input, shape index: {}]   ;;  %s3098_s2 = inlined_call_operand.hbm [shape: bf16[2,32,32], index: 2, kind: input, shape index: {}]   ;;  %s3099_s3 = inlined_call_operand.vmem [shape: f32[2,1,32], index: 3, kind: input, shape index: {}]   ;;  %s3100_s4 = inlined_call_operand.hbm [shape: bf16[2,32,32], index: 4, kind: input, shape index: {}]   ;;  %s3101_s5 = inlined_call_operand.vmem [shape: f32[2,1,32], index: 5, kind: input, shape index: {}]   ;;  %s3102_s6 = inlined_call_operand.hbm [shape: bf16[2,32,32], index: 6, kind: input, shape index: {}]   ;;  %s3103_s7 = inlined_call_operand.vmem [shape: f32[2,1,32], index: 7, kind: input, shape index: {}]   ;;  %s3104_s8 = inlined_call_operand.hbm [shape: bf16[2,32,32], index: 8, kind: input, shape index: {}]   ;;  %s3105_s9 = inlined_call_operand.vmem [shape: f32[2,1,32], index: 9, kind: input, shape index: {}]   ;;  %s3106_s10 = inlined_call_operand.hbm [shape: f32[2,1,32], index: 10, kind: input, shape index: {}]   ;;  %s3107_s11 = inlined_call_operand.vmem [shape: f32[2,1,32], index: 11, kind: input, shape index: {}]   ;;  %s3108_s12 = inlined_call_operand.hbm [shape: bf16[2,32,32], index: 12, kind: input, shape index: {}]   ;;  %s3109_s13 = inlined_call_operand.vmem [shape: f32[2,1,32], index: 13, kind: input, shape index: {}]   ;;  %s3110_s14 = inlined_call_operand.hbm [shape: bf16[2,32,32], index: 14, kind: input, shape index: {}]   ;;  %s3111_s15 = inlined_call_operand.vmem [shape: f32[2,1,32], index: 15, kind: input, shape index: {}]   ;;  %s3112_s16 = inlined_call_operand.hbm [shape: f32[2,1,32], index: 16, kind: input, shape index: {}]   ;;  %s3113_s17 = inlined_call_operand.vmem [shape: f32[2,1,32], index: 17, kind: input, shape index: {}]   ;;  %s3114_s18 = inlined_call_operand.hbm [shape: f32[2,8,32], index: 18, kind: output, shape index: {}]  }
   0x1   :  { %3127 = sst [smem:[#allocation34_spill]] %s3096_s0 }
   0x2   :  { %3128 = sst [smem:[#allocation35_spill]] %s3097_s1 }
   0x3   :  { %3129 = sst [smem:[#allocation36_spill]] %s3098_s2 }
   0x4   :  { %3130 = sst [smem:[#allocation37_spill]] %s3099_s3 }
   0x5   :  { %3131 = sst [smem:[#allocation38_spill]] %s3100_s4 }
   0x6   :  { %3132 = sst [smem:[#allocation39_spill]] %s3101_s5 }
   0x7   :  { %3133 = sst [smem:[#allocation40_spill]] %s3102_s6 }
   0x8   :  { %3134 = sst [smem:[#allocation41_spill]] %s3103_s7 }
   0x9   :  { %3135 = sst [smem:[#allocation42_spill]] %s3104_s8 }
   0xa   :  { %3136 = sst [smem:[#allocation43_spill]] %s3105_s9 }
   0xb   :  { %3137 = sst [smem:[#allocation44_spill]] %s3106_s10 }
   0xc   :  { %3138 = sst [smem:[#allocation45_spill]] %s3107_s11 }
   0xd   :  { %3139 = sst [smem:[#allocation46_spill]] %s3108_s12 }
   0xe   :  { %3140 = sst [smem:[#allocation47_spill]] %s3109_s13 }
   0xf   :  { %3141 = sst [smem:[#allocation48_spill]] %s3110_s14 }
  0x10   :  { %3142 = sst [smem:[#allocation49_spill]] %s3111_s15 }
  0x11   :  { %3143 = sst [smem:[#allocation50_spill]] %s3112_s16 }
  0x12   :  { %3144 = sst [smem:[#allocation51_spill]] %s3113_s17 }
  0x13   :  { %3145 = sst [smem:[#allocation52_spill]] %s3114_s18 }
  0x14   :  { %23 = vsyncpa [#allocation4], 0 }
  0x15   :  { %25 = vsyncpa [#allocation4 + $0x1], 0 }
  0x16   :  { %26 = vsyncpa [#allocation7], 0 }
  0x17   :  { %27 = vsyncpa [#allocation5], 0 }
  0x18   :  { %29 = vsyncpa [#allocation5 + $0x1], 0  ;;  %s2617_s27 = smov 0   ;;  %s2619_s28 = smov 0  }
  0x19   :  { %s2621_s29 = smov 0   ;;  %s2623_s30 = smov 0  }
  0x1a   :  { %s2625_s0 = smov 0   ;;  %s2627_s19 = smov 0  }
  0x1b   :  { %s2629_s1 = smov 0   ;;  %s2631_s20 = smov 0  }
  0x1c   :  { %s2633_s21 = smov 0   ;;  %s2635_s22 = smov 0  }
  0x1d   :  { %s2637_s2 = smov 0  }
  0x1e LB: > { %3146 = sst [smem:[#allocation21_spill]] %s2478_s28  ;;  %s1787_s23 = sadd.s32 4294967294, %s2514_s2   ;;  %s2514_s2 = sphi %s2637_s2, %s35_s2   ;;  %s2510_s22 = sphi %s2635_s22, %s3214_s22   ;;  %s2506_s21 = sphi %s2633_s21, %s3213_s21   ;;  %s2502_s20 = sphi %s2631_s20, %s3212_s20   ;;  %s2498_s1 = sphi %s2629_s1, %s3211_s1   ;;  %s2494_s19 = sphi %s2627_s19, %s3210_s19   ;;  %s2490_s0 = sphi %s2625_s0, %s3216_s0   ;;  %s2486_s30 = sphi %s2623_s30, %s3215_s30   ;;  %s2482_s29 = sphi %s2621_s29, %s3208_s29   ;;  %s2478_s28 = sphi %s2619_s28, %s3207_s28   ;;  %s2474_s27 = sphi %s2617_s27, %s3206_s27  }
  0x1f   : > { %3147 = sst [smem:[#allocation22_spill]] %s2482_s29  ;;  %s44_s24 = sadd.s32 1, %s2506_s21 }
  0x20   : > { %3148 = sst [smem:[#allocation23_spill]] %s2486_s30  ;;  %p45_p0 = scmp.ge.s32.totalorder %s44_s24, 2 }
  0x21   : > { %3149 = sst [smem:[#allocation24_spill]] %s2494_s19  ;;  %s47_s25 = sadd.s32 1, %s2510_s22 }
  0x22   : > { %3150 = sst [smem:[#allocation25_spill]] %s2498_s1  ;;  %s54_s26 = sadd.s32 1, %s2494_s19 }
  0x23   : > { %3151 = sst [smem:[#allocation26_spill]] %s2502_s20  ;;  %p61_p1 = scmp.ne.s32.totalorder %s2494_s19, %s2490_s0 }
  0x24   : > { %3152 = sst [smem:[#allocation27_spill]] %s2506_s21  ;;  %s3218_s24 = smov (%p45_p0, %s44_s24), 0 }
  0x25   : > { %3153 = sst [smem:[#allocation28_spill]] %s2510_s22  ;;  %s3220_s25 = smov (!%p45_p0, %s47_s25), %s2510_s22 }
  0x26   : > { %3154 = sst [smem:[#allocation29_spill]] %s3218_s24  ;;  %p62_p2 = scmp.eq.s32.totalorder %s2514_s2, 0 }
  0x27   : > { %p67_p3 = scmp.ne.s32.totalorder %s2490_s0, %s2486_s30  ;;  %p49_p4 = scmp.ge.s32.totalorder %s3220_s25, 2 }
  0x28   : > { %s98_s18 = ssub.s32 %s2506_s21, %s3218_s24  ;;  %p2689_p5 = por %p62_p2, %p61_p1 }
  0x29   : > { %p99_p6 = scmp.eq.s32.totalorder %s98_s18, 0  ;;  %s3222_s25 = smov (%p49_p4, %s3220_s25), 0 }
  0x2a   : > { %3156 = sst [smem:[#allocation30_spill]] %s3222_s25  ;;  %s101_s17 = sadd.s32 1, %s2482_s29 }
  0x2b   : > { %p108_p7 = scmp.ne.s32.totalorder %s2482_s29, %s2478_s28  ;;  %s51_s15 = ssub.s32 %s2510_s22, %s3222_s25 }
  0x2c   : > { %p534_p8 = scmp.eq.s32.totalorder %s1787_s23, 3  ;;  %p52_p9 = scmp.eq.s32.totalorder %s51_s15, 0 }
  0x2d   : > { %p2700_p10 = por %p108_p7, %p62_p2  ;;  %p1963_p12 = scmp.lt.s32.totalorder %s2514_s2, 4 }
  0x2e   : > { %s2705_s24 = scalar_select %p99_p6, %s2482_s29, %s101_s17  }
  0x2f   : > { %s2708_s11 = scalar_select %p52_p9, %s2494_s19, %s54_s26  }
  0x30   : > { %3158 = sst [smem:[#allocation31_spill]] %s2705_s24  ;;  %p2713_p11 = por %p534_p8, %p67_p3 }
  0x31   : > { %3159 = sst [smem:[#allocation32_spill]] %s2708_s11  ;;  %s566_s23 = sand.u32 1, %s2514_s2  }
  0x32   : > { %s3160_s18 = scalar_select %p2713_p11, 1, 0 }
  0x33   : > { %s568_s15 = sand.u32 1, %s2494_s19   ;;  %s1792_s9 = sshll.u32 %s2510_s22, 3 }
  0x34   : > { %3161 = sst [smem:[#allocation33_spill]] %s3160_s18  ;;  %s1791_s25 = sshll.u32 %s568_s15, 3 }
  0x35   : > { %s3162_s3 = sld [smem:[#allocation34_spill]]  ;;  %s570_s24 = scalar_lea.vmem [#allocation3], %s1791_s25 }
  0x36   : > { %s578_s16 = sshll.u32 %s570_s24, 4  ;;  %p1931_p13 = pnand %p1963_p12, %p2689_p5  ;;  %s579_s16 = int_to_ptr.vmem [resolvable:$true] %s578_s16 }
  0x37   : > { %p2728_p0 = pnand %p1963_p12, %p2700_p10  ;;  %s2733_s11 = sand.u32 1, %s2482_s29  }
  0x38   : > { %s2736_s15 = sshll.u32 %s2506_s21, 4  ;;  %s2742_s5 = sshll.u32 %s2733_s11, 4 }
  0x39   : > { %s3164_s13 = sld [smem:[#allocation36_spill]]  ;;  %s589_s24 = scalar_lea.vmem [#allocation8], %s2742_s5 }
  0x3a   : > { %s597_s25 = sshll.u32 %s589_s24, 4  ;;  %s3165_s4 = sld [smem:[#allocation38_spill]]  ;;  %s598_s25 = int_to_ptr.vmem [resolvable:$true] %s597_s25 }
  0x3b   : > { %s574_s1 = scalar_lea.hbm %s3162_s3, %s1792_s9  ;;  %s2738_s3 = scalar_lea.sflag [#allocation4], %s566_s23 }
  0x3c   : > { %s576_s17 = sshll.u32 %s574_s1, 4  ;;  %s2516_s23 = smov 64   ;;  %s577_s17 = int_to_ptr.hbm [resolvable:$true] %s576_s17 }
  0x3d   : > { %1933 = dma.hbm_to_vmem [thread:$0]  (!%p1931_p13), %s577_s17, 128, %s579_s16, %s2738_s3  }
  0x3e   : > { %s2517_s16 = smov 4   ;;  %s3166_s6 = sld [smem:[#allocation40_spill]] }
  0x3f   : > { %s594_s1 = scalar_lea.hbm %s3164_s13, %s2736_s15  ;;  %s617_s13 = scalar_lea.vmem [#allocation9], %s2742_s5 }
  0x40   : > { %s595_s20 = sshll.u32 %s594_s1, 4  ;;  %s622_s9 = scalar_lea.hbm %s3165_s4, %s2736_s15  ;;  %s596_s20 = int_to_ptr.hbm [resolvable:$true] %s595_s20 }
  0x41   : > { %1936 = dma.hbm_to_vmem [thread:$0]  (!%p2728_p0), %s596_s20, 256, %s598_s25, %s2738_s3, %s2516_s23, %s2516_s23, %s2517_s16  }
  0x42   : > { %s625_s1 = sshll.u32 %s617_s13, 4  ;;  %s623_s22 = sshll.u32 %s622_s9, 4  ;;  %s626_s1 = int_to_ptr.vmem [resolvable:$true] %s625_s1  ;;  %s624_s22 = int_to_ptr.hbm [resolvable:$true] %s623_s22 }
  0x43   : > { %1939 = dma.hbm_to_vmem [thread:$0]  (!%p2728_p0), %s624_s22, 256, %s626_s1, %s2738_s3, %s2516_s23, %s2516_s23, %s2517_s16  }
  0x44   : > { %s650_s25 = scalar_lea.hbm %s3166_s6, %s2736_s15  ;;  %s645_s17 = scalar_lea.vmem [#allocation10], %s2742_s5 }
  0x45   : > { %s653_s7 = sshll.u32 %s645_s17, 4  ;;  %s651_s4 = sshll.u32 %s650_s25, 4  ;;  %s654_s7 = int_to_ptr.vmem [resolvable:$true] %s653_s7  ;;  %s652_s4 = int_to_ptr.hbm [resolvable:$true] %s651_s4 }
  0x46   : > { %1942 = dma.hbm_to_vmem [thread:$0]  (!%p2728_p0), %s652_s4, 256, %s654_s7, %s2738_s3, %s2516_s23, %s2516_s23, %s2517_s16  }
  0x47   : > { %s3167_s8 = sld [smem:[#allocation42_spill]]  ;;  %s673_s1 = scalar_lea.vmem [#allocation11], %s2742_s5 }
  0x48   : > { %s681_s24 = sshll.u32 %s673_s1, 4  ;;  %s3168_s10 = sld [smem:[#allocation44_spill]]  ;;  %s682_s24 = int_to_ptr.vmem [resolvable:$true] %s681_s24 }
  0x49   : > { %s700_s7 = scalar_lea.vmem [#allocation12], %s2733_s11  ;;  %s3169_s12 = sld [smem:[#allocation46_spill]] }
  0x4a   : > { %s707_s9 = sshll.u32 %s700_s7, 4  ;;  %s3170_s14 = sld [smem:[#allocation48_spill]]  ;;  %s708_s9 = int_to_ptr.vmem [resolvable:$true] %s707_s9 }
  0x4b   : > { %p114_p4 = scmp.ne.s32.totalorder %s2478_s28, %s2474_s27  ;;  %p1788_p6 = scmp.ge.s32.totalorder %s2514_s2, 1 }
  0x4c   : > { %p541_p10 = scmp.lt.s32.totalorder %s2514_s2, 5  ;;  %s3174_s1 = sld [smem:[#allocation35_spill]] }
  0x4d   : > { %s678_s13 = scalar_lea.hbm %s3167_s8, %s2736_s15  ;;  %s779_s27 = scalar_lea.vmem [#allocation15], %s2733_s11 }
  0x4e   : > { %s679_s20 = sshll.u32 %s678_s13, 4  ;;  %s703_s17 = scalar_lea.hbm %s3168_s10, %s2506_s21  ;;  %s680_s20 = int_to_ptr.hbm [resolvable:$true] %s679_s20 }
  0x4f   : > { %1945 = dma.hbm_to_vmem [thread:$0]  (!%p2728_p0), %s680_s20, 256, %s682_s24, %s2738_s3, %s2516_s23, %s2516_s23, %s2517_s16  }
  0x50   : > { %s705_s22 = sshll.u32 %s703_s17, 4  ;;  %s729_s6 = scalar_lea.hbm %s3169_s12, %s2736_s15  ;;  %s706_s22 = int_to_ptr.hbm [resolvable:$true] %s705_s22 }
  0x51   : > { %1948 = dma.hbm_to_vmem [thread:$0]  (!%p2728_p0), %s706_s22, 16, %s708_s9, %s2738_s3  }
  0x52   : > { %s724_s24 = scalar_lea.vmem [#allocation13], %s2742_s5  ;;  %s730_s25 = sshll.u32 %s729_s6, 4  ;;  %s731_s25 = int_to_ptr.hbm [resolvable:$true] %s730_s25 }
  0x53   : > { %s732_s20 = sshll.u32 %s724_s24, 4  ;;  %s757_s7 = scalar_lea.hbm %s3170_s14, %s2736_s15  ;;  %s733_s20 = int_to_ptr.vmem [resolvable:$true] %s732_s20 }
  0x54   : > { %1951 = dma.hbm_to_vmem [thread:$0]  (!%p2728_p0), %s731_s25, 256, %s733_s20, %s2738_s3, %s2516_s23, %s2516_s23, %s2517_s16  }
  0x55   : > { %s752_s9 = scalar_lea.vmem [#allocation14], %s2742_s5  ;;  %s758_s13 = sshll.u32 %s757_s7, 4  ;;  %s759_s13 = int_to_ptr.hbm [resolvable:$true] %s758_s13 }
  0x56   : > { %s760_s22 = sshll.u32 %s752_s9, 4  ;;  %s2819_s6 = sadd.s32 4294967295, %s2514_s2   ;;  %s761_s22 = int_to_ptr.vmem [resolvable:$true] %s760_s22 }
  0x57   : > { %1954 = dma.hbm_to_vmem [thread:$0]  (!%p2728_p0), %s759_s13, 256, %s761_s22, %s2738_s3, %s2516_s23, %s2516_s23, %s2517_s16  }
  0x58   : > { %p68_p2 = scmp.eq.s32.totalorder %s2819_s6, 0  ;;  %p528_p5 = scmp.eq.s32.totalorder %s2819_s6, 3 }
  0x59   : > { %s553_s24 = sshll.u32 %s3174_s1, 4  ;;  %s2518_s25 = smov [#allocation6]   ;;  %s554_s24 = int_to_ptr.hbm [resolvable:$true] %s553_s24 }
  0x5a   : > { %p2831_p7 = por %p68_p2, %p67_p3  ;;  %p2837_p8 = por %p114_p4, %p68_p2 }
  0x5b   : > { %p2844_p9 = por %p528_p5, %p61_p1  ;;  %p2852_p3 = pnand %p1788_p6, %p541_p10 }
  0x5c   : > { %s555_s4 = sshll.u32 %s2518_s25, 4  ;;  %s3176_s9 = sld [smem:[#allocation50_spill]]  ;;  %s556_s4 = int_to_ptr.vmem [resolvable:$true] %s555_s4 }
  0x5d   : > { %p1926_p12 = pneg %p2852_p3  ;;  %s786_s16 = sshll.u32 %s779_s27, 4  ;;  %s787_s16 = int_to_ptr.vmem [resolvable:$true] %s786_s16 }
  0x5e   : > { %s803_s1 = sand.u32 (!%p2852_p3), 1, %s2819_s6   ;;  %s3120_s25 = sand.u32 (!%p2852_p3), 1, %s2490_s0  }
  0x5f   : > { %p1927_p1 = pnand %p1926_p12, %p68_p2  ;;  %s2874_s17 = sshll.u32 (!%p2852_p3), %s3120_s25, 3 }
  0x60   : > { %801 = sbr.rel (%p2852_p3) target bundleno = 1966 (0x7ae), region = 92  ;;  %s804_s7 = scalar_lea.sflag (!%p2852_p3), [#allocation4], %s803_s1 }
  0x61   : > { %1929 = dma.hbm_to_vmem [thread:$0]  (!%p1927_p1), %s554_s24, 128, %s556_s4, [#allocation7]  }
  0x62   : > { %s782_s22 = scalar_lea.hbm %s3176_s9, %s2506_s21  ;;  %s807_s11 = scalar_lea.vmem (!%p2852_p3), [#allocation3], %s2874_s17 }
  0x63   : > { %s784_s13 = sshll.u32 %s782_s22, 4  ;;  %s785_s13 = int_to_ptr.hbm [resolvable:$true] %s784_s13 }
  0x64   : > { %1957 = dma.hbm_to_vmem [thread:$0]  (!%p2728_p0), %s785_s13, 16, %s787_s16, %s2738_s3  }
  0x65   : > { %2457 = dma.done.wait (%p2831_p7), %s804_s7, 128  }
  0x66   : > { %2459 = vsyncadd (%p2831_p7), %s804_s7, 4294967168 }
  0x67   : > { %2461 = dma.done.wait (%p68_p2), [#allocation7], 128  }
  0x68   : > { %2463 = vsyncadd (%p68_p2), [#allocation7], 4294967168  ;;  %s2886_s26 = sand.u32 1, %s2478_s28  }
  0x69   : > { %s2889_s3 = sshll.u32 %s2886_s26, 4 }
  0x6a   : > { %2465 = dma.done.wait (%p2837_p8), %s804_s7, 1568  }
  0x6b   : > { %2467 = vsyncadd (%p2837_p8), %s804_s7, 4294965728  ;;  %s3177_s15 = sld [smem:[#allocation25_spill]]  ;;  %s832_s7 = scalar_lea.vmem [#allocation9], %s2889_s3 }
  0x6c   : > { %s3182_s21 = sld [smem:[#allocation45_spill]]  ;;  %s842_s24 = scalar_lea.vmem [#allocation10], %s2889_s3 }
  0x6d   : > { %s3183_s18 = sld [smem:[#allocation47_spill]]  ;;  %s852_s8 = scalar_lea.vmem [#allocation11], %s2889_s3 }
  0x6e   : > { %s3184_s22 = sld [smem:[#allocation49_spill]]  ;;  %s861_s10 = scalar_lea.vmem [#allocation12], %s2886_s26 }
  0x6f   : > { %s3185_s1 = sld [smem:[#allocation51_spill]]  ;;  %s871_s20 = scalar_lea.vmem [#allocation13], %s2889_s3 }
  0x70   : > { %s881_s4 = scalar_lea.vmem [#allocation14], %s2889_s3  ;;  %s890_s12 = scalar_lea.vmem [#allocation15], %s2886_s26 }
  0x71   : > { %p1006_p13 = scmp.lt.s32.totalorder %s3177_s15, 1  ;;  %s2940_s14 = scalar_lea.vmem [#allocation16], %s2874_s17 }
  0x72   : > { %p1821_p0 = scmp.ne.s32.totalorder %s3177_s15, 0 }
  0x73   : > { %s2898_s6 = scalar_select %p1006_p13, %s3177_s15, 1 }
  0x74   : > { %1034 = sbr.rel (%p1821_p0) target bundleno = 125 (0x7d), region = 136 }
  0x75   : > { %s1020_s19 = scalar_lea.vmem %s3182_s21, %s2898_s6  ;;  %s1023_s9 = scalar_lea.vmem %s3183_s18, %s2898_s6 }
  0x76   : > { %s1026_s13 = scalar_lea.vmem %s3184_s22, %s2898_s6  ;;  %s1029_s25 = scalar_lea.vmem %s3185_s1, %s2898_s6 }
  0x79   : > { %v1035_v0 = vld [vmem:[%s807_s11] sm:$0xff]  ;;  %v1036_v1 = vld [vmem:[#allocation6] sm:$0xff]  ;;  %vm1038_vm0 = vcmask 261120  }
  0x7a   : > { %v1037_v2 = vadd.f32 %v1036_v1, %v1035_v0 }
  0x7c   : > { %1039 = vst.msk [vmem:[%s2940_s14] sm:$0xff] %vm1038_vm0, %v1037_v2 }
  0x7d PF: > { %s3186_s28 = scalar_lea.vmem [#allocation8], %s2889_s3  ;;  %v1893_v4 = vld [vmem:[%s832_s7 + $0x8] sm:$0xff]  ;;  %v1892_v6 = vld [vmem:[%s832_s7] sm:$0xff]  ;;  %vm1062_vm1 = vcmask 261120   ;;  %s3188_s18 = sld [smem:[#allocation37_spill]]  ;;  %vm1149_vm2 = vcmask 130048  }
  0x7e   : > { %v1891_v3 = vld [vmem:[%s3186_s28 + $0x8] sm:$0xff]  ;;  %s3187_s29 = smov %s3186_s28  ;;  %1105 = vmatpush.bf16.msra.mxu1 %v1893_v4  ;;  %s3190_s5 = sld [smem:[#allocation39_spill]]  ;;  %v1894_v27 = vld [vmem:[%s842_s24] sm:$0xff]  ;;  %vm1169_vm3 = vcmask 64512   ;;  %vm1185_vm4 = vcmask 1043456   ;;  %vm1266_vm5 = vcmask 261248  }
  0x7f   : > { %v1890_v5 = vld [vmem:[%s3187_s29] sm:$0xff]  ;;  %1072 = vmatpush.bf16.msra.mxu0 %v1891_v3  ;;  %s2519_s22 = smov 112   ;;  %v1895_v26 = vld [vmem:[%s842_s24 + $0x8] sm:$0xff]  ;;  %s3192_s7 = sld [smem:[#allocation41_spill]] }
  0x80   : > { %1138 = vmatpush.bf16.msra.mxu2 %v1895_v26  ;;  %s2520_s24 = smov 16   ;;  %v1897_v62 = vld [vmem:[%s852_s8 + $0x8] sm:$0xff]  ;;  %v1896_v63 = vld [vmem:[%s852_s8] sm:$0xff]  ;;  %s3194_s21 = sld [smem:[#allocation43_spill]] }
  0x81   : > { %s3199_s3 = sld [smem:[#allocation26_spill]]  ;;  %s1468_s29 = sshll.u32 %s2940_s14, 4  ;;  %s1469_s29 = int_to_ptr.vmem [resolvable:$true] %s1468_s29 }
  0x82   : > { %1106 = vmatpush.bf16.msra.mxu1 %v1892_v6  ;;  %s3203_s26 = sand.u32 1, %s2490_s0  }
  0x83   : > { %v2949_v7 = vld [vmem:[%s2940_s14] sm:$0xff]  ;;  %1073 = vmatpush.bf16.msra.mxu0 %v1890_v5  ;;  %s3189_s17 = scalar_lea.vmem %s3188_s18, %s2898_s6 }
  0x84   : > { %v1041_v8 = vpack.c.bf16 %v2949_v7, %v2949_v7  ;;  %v2060_v9 = vld [vmem:[%s3189_s17] ss:$0 sm:$0xff]  ;;  %s3191_s16 = scalar_lea.vmem %s3190_s5, %s2898_s6  ;;  %1139 = vmatpush.bf16.msra.mxu2 %v1894_v27 }
  0x85   : > { %v2061_v10 = vld [vmem:[%s3191_s16] ss:$0 sm:$0xff]  ;;  %s3193_s28 = scalar_lea.vmem %s3192_s7, %s2898_s6 }
  0x86   : > { %1830 = vmatmul.msk.bf16.vlgmr.msra.gmra.mxu0 %vm1062_vm1, %v1041_v8  ;;  %1839 = vmatmul.msk.bf16.vlgmr.msra.gmra.mxu1 %vm1062_vm1, %v1041_v8  ;;  %v2062_v32 = vld [vmem:[%s3193_s28] ss:$0 sm:$0xff]  ;;  %s3195_s18 = scalar_lea.vmem %s3194_s21, %s2898_s6 }
  0x87   : > { %1848 = vmatmul.msk.bf16.vlgmr.msra.gmra.mxu2 %vm1062_vm1, %v1041_v8  ;;  %v2063_v3 = vld [vmem:[%s3195_s18] ss:$0 sm:$0xff] }
 0x103   : > { %v1075_v11 = vpop.f32.mrf.mxu0  ;;  %v1108_v12 = vpop.f32.mrf.mxu1 }
 0x104   : > { %v1076_v13 = vadd.f32 %v2060_v9, %v1075_v11  ;;  %v1109_v14 = vadd.f32 %v2061_v10, %v1108_v12  ;;  %v2521_v10 = vmov 32.0  }
 0x106   : > { %v1147_v15 = vpack.c.bf16 %v1109_v14, %v1109_v14  ;;  %v1145_v16 = vmul.f32 0.25, %v1076_v13 }
 0x108   : > { %1207 = vrot.lane.b32.xlu0 %v1147_v15, %s2519_s22  ;;  %v1154_v17 = vsel %vm1149_vm2, %v1147_v15, 0  ;;  %v1146_v20 = vpack.c.bf16 %v1145_v16, %v1145_v16 }
 0x109   : > { %1163 = vmatpush.bf16.xpose.msra.mxu3 %v1154_v17 }
 0x10a   : > { %v1141_v35 = vpop.f32.mrf.mxu2 }
 0x10b   : > { %v1077_v18 = vpop.f32.mrf.mxu0  ;;  %v1110_v19 = vpop.f32.mrf.mxu1  ;;  %v1142_v36 = vadd.f32 %v2062_v32, %v1141_v35  ;;  %v2064_v32 = vld [vmem:[%s861_s10] ss:$0 sm:$0xff] }
 0x10d   : > { %v1148_v38 = vpack.c.bf16 %v1142_v36, %v1142_v36 }
 0x10f   : > { %v1187_v39 = vsel %vm1185_vm4, %v1148_v38, 0 }
 0x110   : > { %1204 = vrot.lane.b32.xlu0 %v1146_v20, %s2519_s22  ;;  %1849 = vmatmul.msk.bf16.vlgmr.msra.gmra.mxu3 %vm1149_vm2, %v1146_v20 }
 0x111   : > { %1196 = vmatpush.bf16.msrb.mxu0 %v1187_v39  ;;  %1299 = vmatpush.bf16.msrb.mxu3 %v1897_v62  ;;  %v1901_v39 = vld [vmem:[%s881_s4 + $0x8] sm:$0xff] }
 0x112   : > { %v1143_v42 = vpop.f32.mrf.mxu2 }
 0x115   : > { %1300 = vmatpush.bf16.msrb.mxu3 %v1896_v63 }
 0x17a   : > { %v1208_v21 = vpop.permute.xlu0 %1207 }
 0x17b   : > { %v1213_v22 = vsel %vm1149_vm2, %v1208_v21, 0  ;;  %v1899_v21 = vld [vmem:[%s871_s20 + $0x8] sm:$0xff] }
 0x17c   : > { %1222 = vmatpush.bf16.xpose.msrb.mxu1 %v1213_v22  ;;  %1376 = vmatpush.bf16.msra.mxu0 %v1899_v21  ;;  %v1898_v22 = vld [vmem:[%s871_s20] sm:$0xff] }
 0x180   : > { %1377 = vmatpush.bf16.msra.mxu0 %v1898_v22 }
 0x182   : > { %v1205_v23 = vpop.permute.xlu0 %1204 }
 0x183   : > { %1851 = vmatmul.msk.bf16.vlgmr.msrb.gmra.mxu1 %vm1149_vm2, %v1205_v23 }
 0x184   : > { %1414 = vmatpush.bf16.msra.mxu1 %v1901_v39 }
 0x193   : > { %v1165_v24 = vpop.f32.mrf.mxu3 }
 0x194   : > { %v1170_v31 = vsel %vm1169_vm3, %v1165_v24, -inf }
 0x19b   : > { %v1167_v25 = vpop.f32.mrf.mxu3 }
 0x200   : > { %v1224_v28 = vpop.f32.mrf.mxu1 }
 0x201   : > { %v1228_v29 = vsel %vm1169_vm3, %v1224_v28, -inf }
 0x202   : > { %1229 = vmax.xlane.f32.xlu1 %v1228_v29 }
 0x208   : > { %v1226_v30 = vpop.f32.mrf.mxu1 }
 0x20a   : > { %1171 = vmax.xlane.f32.xlu1 %v1170_v31 }
 0x275   : > { %v1230_v33 = vpop.xlane.xlu1 %1229 }
 0x276   : > { %v1231_v34 = vsub.f32 %v1224_v28, %v1230_v33 }
 0x278   : > { %v1232_v37 = vmul.f32 1.442695, %v1231_v34  ;;  %v2065_v34 = vld [vmem:[%s1020_s19] ss:$0 sm:$0xff] }
 0x27a   : > { %2070 = vpow2.f32 %v1232_v37 }
 0x27d   : > { %v1172_v40 = vpop.xlane.xlu1 %1171 }
 0x27e   : > { %v1173_v41 = vsub.f32 %v1165_v24, %v1172_v40  ;;  %v1900_v40 = vld [vmem:[%s881_s4] sm:$0xff]  ;;  %s1881_s4 = sshll.u32 %s3199_s3, 3 }
 0x27f   : > { %1415 = vmatpush.bf16.msra.mxu1 %v1900_v40 }
 0x280   : > { %v2071_v43 = vpop.eup %2070  ;;  %v1174_v44 = vmul.f32 1.442695, %v1173_v41  ;;  %v2066_v41 = vld [vmem:[%s1023_s9] ss:$0 sm:$0xff] }
 0x281   : > { %v1234_v45 = vsel %vm1169_vm3, %v2071_v43, 0.0 }
 0x282   : > { %2072 = vpow2.f32 %v1174_v44  ;;  %1235 = vadd.xlane.f32.xlu2 %v1234_v45 }
 0x288   : > { %v2073_v46 = vpop.eup %2072 }
 0x289   : > { %v1176_v47 = vsel %vm1169_vm3, %v2073_v46, 0.0 }
 0x28a   : > { %1177 = vadd.xlane.f32.xlu0 %v1176_v47  ;;  %v2067_v47 = vld [vmem:[%s1026_s13] ss:$0 sm:$0xff] }
 0x29a   : > { %1241 = vrot.lane.b32.xlu2 %v1148_v38, %s2519_s22  ;;  %s3200_s22 = sld [smem:[#allocation52_spill]] }
 0x2a0   : > { %s3201_s7 = smov %s3200_s22  ;;  %s1466_s27 = scalar_lea.hbm %s3200_s22, %s1881_s4 }
 0x2a1   : > { %s1470_s30 = sshll.u32 %s1466_s27, 4  ;;  %s1471_s30 = int_to_ptr.hbm [resolvable:$true] %s1470_s30 }
 0x2a2   : > { %s2398_s21 = sshra.s32 %s1471_s30, 4  ;;  %s2399_s21 = int_to_ptr.hbm [resolvable:$true] %s2398_s21 }
 0x2a3   : > { %s2400_s18 = scalar_lea.hbm %s2399_s21, 8  ;;  %p2405_p6 = scmp.lt.s32.totalorder %s2399_s21, %s3201_s7 }
 0x2a4   : > { %p2401_p2 = scmp.ne.s32.totalorder %s2399_s21, %s2400_s18 }
 0x2a6   : > { %p2402_p4 = pnand %p2401_p2, %p2844_p9 }
 0x2a8   : > { %p2403_p5 = pneg %p2402_p4 }
 0x2f5   : > { %v1236_v48 = vpop.xlane.xlu2 %1235 }
 0x2f6   : > { %2074 = vrcp.f32 %v1236_v48 }
 0x2fc   : > { %v2075_v49 = vpop.eup %2074 }
 0x2fd   : > { %v1238_v50 = vmul.f32 %v2075_v49, %v2071_v43  ;;  %v1242_v51 = vpop.permute.xlu2 %1241  ;;  %v1178_v52 = vpop.xlane.xlu0 %1177 }
 0x2fe   : > { %2076 = vrcp.f32 %v1178_v52  ;;  %v1247_v53 = vsel %vm1185_vm4, %v1242_v51, 0 }
 0x2ff   : > { %1256 = vmatpush.bf16.msrb.mxu2 %v1247_v53  ;;  %v1239_v54 = vpack.c.bf16 %v1238_v50, %v1238_v50  ;;  %2078 = vrcp.f32 %v2521_v10 }
 0x302   : > { %1852 = vmatmul.msk.bf16.vlgmr.msrb.gmra.mxu2 %vm1169_vm3, %v1239_v54 }
 0x304   : > { %v2077_v55 = vpop.eup %2076 }
 0x305   : > { %v1180_v56 = vmul.f32 %v2077_v55, %v2073_v46  ;;  %v2079_v11 = vpop.eup %2078 }
 0x306   : > { %v1313_v12 = vmul.f32 32.0, %v2079_v11  ;;  %vm1317_vm6 = vweird.f32 %v2079_v11 }
 0x307   : > { %v1181_v57 = vpack.c.bf16 %v1180_v56, %v1180_v56 }
 0x308   : > { %v1314_v13 = vsub.f32 1.0, %v1313_v12 }
 0x309   : > { %1850 = vmatmul.msk.bf16.vlgmr.msrb.gmra.mxu0 %vm1169_vm3, %v1181_v57 }
 0x30a   : > { %v1315_v14 = vmul.f32 %v2079_v11, %v1314_v13 }
 0x30c   : > { %v1316_v15 = vadd.f32 %v2079_v11, %v1315_v14 }
 0x30e   : > { %v1318_v16 = vsel %vm1317_vm6, %v2079_v11, %v1316_v15 }
 0x385   : > { %v1258_v58 = vpop.f32.mrf.mxu2 }
 0x386   : > { %1263 = vrot.lane.b32.xlu1 %v1258_v58, %s2520_s24  ;;  %v1198_v59 = vpop.f32.mrf.mxu0 }
 0x387   : > { %1202 = vst.msk [vmem:[#allocation2] sm:$0xff] %vm1149_vm2, %v1198_v59 }
 0x38d   : > { %v1260_v60 = vpop.f32.mrf.mxu2 }
 0x38e   : > { %v1200_v61 = vpop.f32.mrf.mxu0 }
 0x3f8   : > { %v1264_v0 = vpop.permute.xlu1 %1263 }
 0x3f9   : > { %1267 = vst.msk [vmem:[#allocation2] sm:$0xff] %vm1266_vm5, %v1264_v0 }
 0x400   : > { %v1268_v1 = vld [vmem:[#allocation2] sm:$0xff] }
 0x401   : > { %v1269_v2 = vpack.c.bf16 %v1268_v1, %v1268_v1 }
 0x403   : > { %1861 = vmatmul.msk.bf16.vlgmr.msrb.gmra.mxu3 %vm1062_vm1, %v1269_v2 }
 0x486   : > { %v1302_v4 = vpop.f32.mrf.mxu3 }
 0x487   : > { %v1303_v5 = vadd.f32 %v2063_v3, %v1302_v4  ;;  %v2068_v3 = vld [vmem:[%s890_s12] ss:$0 sm:$0xff]  ;;  %s1456_s12 = scalar_lea.sflag [#allocation5], %s3203_s26 }
 0x489   : > { %v1306_v6 = vadd.f32 %v1303_v5, %v2949_v7 }
 0x48b   : > { %v1309_v8 = vsel %vm1062_vm1, %v1306_v6, 0.0 }
 0x48c   : > { %1310 = vadd.xlane.f32.xlu2 %v1309_v8 }
 0x48e   : > { %v1304_v9 = vpop.f32.mrf.mxu3 }
 0x4ff   : > { %v1311_v17 = vpop.xlane.xlu2 %1310 }
 0x500   : > { %v1319_v18 = vmul.f32 %v1318_v16, %v1311_v17 }
 0x502   : > { %v1320_v19 = vsub.f32 %v1306_v6, %v1319_v18  ;;  %v2069_v6 = vld [vmem:[%s1029_s25] ss:$0 sm:$0xff]  ;;  %s2404_s25 = scalar_lea.hbm %s3201_s7, 16 }
 0x503   : > { %p2406_p7 = scmp.lt.s32.totalorder %s2404_s25, %s2400_s18 }
 0x504   : > { %v1321_v20 = vmul.f32 %v1320_v19, %v1320_v19 }
 0x505   : > { %p2407_p8 = por %p2406_p7, %p2405_p6 }
 0x506   : > { %v1322_v7 = vsel %vm1062_vm1, %v1321_v20, 0.0 }
 0x507   : > { %1323 = vadd.xlane.f32.xlu1 %v1322_v7  ;;  %p2408_p10 = pnand %p2407_p8, %p2403_p5 }
 0x57a   : > { %v1324_v23 = vpop.xlane.xlu1 %1323 }
 0x57b   : > { %v1325_v24 = vmul.f32 %v1324_v23, %v1318_v16 }
 0x57d   : > { %v1326_v25 = vadd.f32 1e-05, %v1325_v24 }
 0x57f   : > { %2080 = vrsqrt.f32 %v1326_v25  ;;  %vm1333_vm8 = vweird.f32 %v1326_v25 }
 0x585   : > { %v2081_v26 = vpop.eup %2080 }
 0x586   : > { %v1328_v27 = vmul.f32 %v2081_v26, %v1326_v25  ;;  %vm1334_vm7 = vweird.f32 %v2081_v26 }
 0x587   : > { %vm1335_vm9 = vmor %vm1333_vm8, %vm1334_vm7 }
 0x588   : > { %v1329_v28 = vmul.f32 %v2081_v26, %v1328_v27 }
 0x58a   : > { %v1330_v29 = vmul.f32 0.5, %v1329_v28 }
 0x58c   : > { %v1331_v30 = vsub.f32 1.5, %v1330_v29 }
 0x58e   : > { %v1332_v31 = vmul.f32 %v2081_v26, %v1331_v30 }
 0x590   : > { %v1336_v33 = vsel %vm1335_vm9, %v2081_v26, %v1332_v31 }
 0x591   : > { %v1337_v35 = vmul.f32 %v1336_v33, %v1320_v19 }
 0x593   : > { %v1341_v36 = vmul.f32 %v2064_v32, %v1337_v35 }
 0x595   : > { %v1345_v37 = vadd.f32 %v2065_v34, %v1341_v36 }
 0x597   : > { %v1346_v38 = vpack.c.bf16 %v1345_v37, %v1345_v37 }
 0x599   : > { %1870 = vmatmul.msk.bf16.vlgmr.msra.gmra.mxu0 %vm1062_vm1, %v1346_v38 }
 0x616   : > { %v1379_v42 = vpop.f32.mrf.mxu0 }
 0x617   : > { %v1380_v43 = vadd.f32 %v2066_v41, %v1379_v42 }
 0x619   : > { %v1383_v44 = vmax.f32 %v1380_v43, 0.0 }
 0x61b   : > { %v1384_v45 = vpack.c.bf16 %v1383_v44, %v1383_v44 }
 0x61d   : > { %1879 = vmatmul.msk.bf16.vlgmr.msra.gmra.mxu1 %vm1062_vm1, %v1384_v45 }
 0x61e   : > { %v1381_v46 = vpop.f32.mrf.mxu0 }
 0x69a   : > { %v1417_v48 = vpop.f32.mrf.mxu1 }
 0x69b   : > { %v1418_v49 = vadd.f32 %v2067_v47, %v1417_v48 }
 0x69d   : > { %v1421_v50 = vadd.f32 %v1418_v49, %v1345_v37 }
 0x69f   : > { %v1424_v51 = vsel %vm1062_vm1, %v1421_v50, 0.0 }
 0x6a0   : > { %1425 = vadd.xlane.f32.xlu0 %v1424_v51 }
 0x6a2   : > { %v1419_v52 = vpop.f32.mrf.mxu1 }
 0x713   : > { %v1426_v53 = vpop.xlane.xlu0 %1425 }
 0x714   : > { %v1427_v54 = vmul.f32 %v1426_v53, %v1318_v16 }
 0x716   : > { %v1428_v55 = vsub.f32 %v1421_v50, %v1427_v54 }
 0x718   : > { %v1429_v56 = vmul.f32 %v1428_v55, %v1428_v55 }
 0x71a   : > { %v1430_v57 = vsel %vm1062_vm1, %v1429_v56, 0.0 }
 0x71b   : > { %1431 = vadd.xlane.f32.xlu0 %v1430_v57 }
 0x78e   : > { %v1432_v58 = vpop.xlane.xlu0 %1431 }
 0x78f   : > { %v1433_v59 = vmul.f32 %v1432_v58, %v1318_v16 }
 0x791   : > { %v1434_v60 = vadd.f32 1e-05, %v1433_v59 }
 0x793   : > { %2082 = vrsqrt.f32 %v1434_v60  ;;  %vm1441_vm11 = vweird.f32 %v1434_v60 }
 0x799   : > { %v2083_v61 = vpop.eup %2082 }
 0x79a   : > { %v1436_v62 = vmul.f32 %v2083_v61, %v1434_v60  ;;  %vm1442_vm10 = vweird.f32 %v2083_v61 }
 0x79b   : > { %vm1443_vm12 = vmor %vm1441_vm11, %vm1442_vm10 }
 0x79c   : > { %v1437_v63 = vmul.f32 %v2083_v61, %v1436_v62 }
 0x79e   : > { %v1438_v0 = vmul.f32 0.5, %v1437_v63 }
 0x7a0   : > { %v1439_v1 = vsub.f32 1.5, %v1438_v0 }
 0x7a2   : > { %v1440_v2 = vmul.f32 %v2083_v61, %v1439_v1 }
 0x7a4   : > { %v1444_v4 = vsel %vm1443_vm12, %v2083_v61, %v1440_v2 }
 0x7a5   : > { %v1445_v5 = vmul.f32 %v1444_v4, %v1428_v55 }
 0x7a7   : > { %v1449_v8 = vmul.f32 %v2068_v3, %v1445_v5 }
 0x7a9   : > { %v1453_v9 = vadd.f32 %v2069_v6, %v1449_v8 }
 0x7ab   : > { %1454 = vst.msk [vmem:[%s2940_s14] sm:$0xff] %vm1062_vm1, %v1453_v9 }
 0x7ac   : > { %2411 = shalt.err (!%p2408_p10)
}
 0x7ad   : > { %1924 = dma.vmem_to_hbm [thread:$0]  (%p2844_p9), %s1469_s29, 128, %s1471_s30, %s1456_s12  }
 0x7ae PF: > { %s3204_s14 = sld [smem:[#allocation23_spill]]  ;;  %p1965_p3 = scmp.ge.s32.totalorder %s2514_s2, 2 }
 0x7b0   : > { %p1959_p12 = pnand %p1965_p3, %p2713_p11 }
 0x7b2   : > { %p1960_p1 = pneg %p1959_p12 }
 0x7b4   : > { %s1482_s11 = sand.u32 1, %s3204_s14  }
 0x7b5   : > { %s1483_s15 = scalar_lea.sflag [#allocation5], %s1482_s11 }
 0x7b6   : > { %2469 = dma.done.wait (%p1960_p1), %s1483_s15, 128  }
 0x7b7   : > { %2471 = vsyncadd (%p1960_p1), %s1483_s15, 4294967168  ;;  %s35_s2 = sadd.s32 1, %s2514_s2   ;;  %s3206_s27 = sld [smem:[#allocation21_spill]] }
 0x7b8   : > { %p32_p13 = scmp.ge.s32.totalorder %s35_s2, 6   ;;  %s3207_s28 = sld [smem:[#allocation22_spill]] }
 0x7b9   : > { %s3208_s29 = sld [smem:[#allocation31_spill]]  ;;  %s3215_s30 = smov %s2490_s0 }
 0x7ba   : > { %s3209_s23 = sld [smem:[#allocation24_spill]] }
 0x7bb   : > { %s3210_s19 = sld [smem:[#allocation32_spill]] }
 0x7bc   : > { %s3211_s1 = sld [smem:[#allocation27_spill]]  ;;  %34 = sbr.rel (!%p32_p13) target bundleno = 30 (0x1e), region = 257 }
 0x7bd   : > { %s3212_s20 = sld [smem:[#allocation28_spill]] }
 0x7be   : > { %s3213_s21 = sld [smem:[#allocation29_spill]] }
 0x7bf   : > { %s3214_s22 = sld [smem:[#allocation30_spill]] }
 0x7c0   : > { %s3216_s0 = smov %s3209_s23 }
 0x7c1   :  { %1489 = vsyncpa [#allocation4], 1 }
 0x7c2   :  { %1491 = vsyncpa [#allocation4 + $0x1], 1 }
 0x7c3   :  { %1492 = vsyncpa [#allocation7], 1 }
 0x7c4   :  { %1493 = vsyncpa [#allocation5], 1 }
 0x7c5   :  { %1495 = vsyncpa [#allocation5 + $0x1], 1 }

</bundles_post_ra>
